<compile_context>
chip_gen: v7x
topology: tpu7x:2x2x1
jax: 0.10.0
libtpu: 0.0.40
codegen_flags: <defaults>
</compile_context>

<pallas_src>
import math

import jax
import jax.numpy as jnp
from jax.experimental import pallas as pl
from jax.experimental.pallas import tpu as pltpu

BN_EPS = 1e-5


def gating_context_kernel(xb_ref, w_ref, xf_ref, gamma_ref, beta_ref, out_ref):
    j = pl.program_id(0)
    tn = out_ref.shape[1]

    # MXU: resident bf16 [B, D] LHS  @  streamed bf16 [D, tn] RHS -> f32 [B, tn].
    gates = jnp.dot(xb_ref[...], w_ref[...], preferred_element_type=jnp.float32)

    # Two-pass batch statistics per feature (biased variance, PyTorch
    # training-mode semantics).  Centered pass avoids E[g^2]-mean^2 cancellation.
    inv_b = 1.0 / gates.shape[0]
    mean = jnp.sum(gates, axis=0, keepdims=True) * inv_b               # [1, tn]
    centered = gates - mean                                            # [B, tn]
    var = jnp.sum(centered * centered, axis=0, keepdims=True) * inv_b  # [1, tn]
    inv_std = jax.lax.rsqrt(var + BN_EPS)

    # gamma/beta are resident over the full feature axis; slice this tile's
    # columns and fold gamma into the normalization scale (one FMA on the tile).
    col0 = pl.multiple_of(j * tn, tn)
    scale = gamma_ref[:, pl.ds(col0, tn)] * inv_std                    # [1, tn]
    shift = beta_ref[:, pl.ds(col0, tn)]                               # [1, tn]

    gate = jax.nn.sigmoid(centered * scale + shift)                    # EUP sigmoid

    # Gate the streamed f32 x tile for this column block.
    out_ref[...] = (xf_ref[...] * gate).astype(out_ref.dtype)


def prepare_gating_weights(gating_weights):
    """One-time weight prep (do at parameter-load time, NOT per forward call)."""
    return gating_weights.astype(jnp.bfloat16)


def _vmem_capacity_bytes():
    """Per-core VMEM capacity; conservative 64 MiB fallback (safe on any gen)."""
    try:
        return int(pltpu.get_tpu_info().vmem_capacity_bytes)
    except Exception:
        return 64 * 1024 * 1024


def _pick_tn(B, D, vmem_budget):
    """Feature-tile width: single step for tiny D, >=8 steps + VMEM-fit for big D."""
    if D <= 512:
        # Two grid steps would only expose the first W DMA; per-step overhead
        # dominates at this size, so use one full-width step.
        return D
    for tn in (1024, 512, 256, 128):
        if D % tn != 0 or tn >= D:
            continue
        n_tiles = D // tn
        if n_tiles < 8:            # need >=8 steps (>=4 / core on v7x) to pipeline W
            continue
        need = (B * D * 2          # resident bf16 x (single-buffered)
                + 2 * D * 4        # resident gamma / beta
                + 3 * D * tn * 2   # W tile stream, Buffered(3)
                + 2 * B * tn * 4   # f32 x tile, double-buffered
                + 2 * B * tn * 4)  # output tile, double-buffered
        if need <= vmem_budget:
            return tn
    return 128 if D % 128 == 0 else D


def gating_context(x, gating_weights, gamma, beta, *, tn=None):
    """x: [B, D] f32, gating_weights: [D, D] (ideally pre-cast bf16), gamma/beta: [D]."""
    B, D = x.shape
    vmem_limit = int(_vmem_capacity_bytes() * 0.75)   # ~48 MiB on v7x, ~96 MiB on v5e/v6e
    if tn is None:
        tn = _pick_tn(B, D, vmem_limit)
    assert D % tn == 0, (D, tn)
    n_tiles = D // tn

    # Weight should already be bf16 (prepare_gating_weights); cast only if not.
    w_bf16 = (gating_weights if gating_weights.dtype == jnp.bfloat16
              else gating_weights.astype(jnp.bfloat16))
    # Hoisted out of the kernel body: cast x once, not once per grid step.
    x_bf16 = x.astype(jnp.bfloat16)
    gamma2 = gamma.reshape(1, D).astype(jnp.float32)
    beta2 = beta.reshape(1, D).astype(jnp.float32)

    cost = pl.CostEstimate(
        flops=2 * B * D * D,
        transcendentals=B * D,                         # sigmoid
        bytes_accessed=D * D * 2 + B * D * 2 + 2 * B * D * 4 + 2 * D * 4)

    def build(use_pipeline_modes):
        def bs(shape, index_map, bufs=None):
            if use_pipeline_modes and bufs is not None:
                return pl.BlockSpec(shape, index_map, pipeline_mode=pl.Buffered(bufs))
            return pl.BlockSpec(shape, index_map)

        in_specs = [
            bs((B, D), lambda j: (0, 0), bufs=1),      # bf16 x: resident MXU LHS
            bs((D, tn), lambda j: (0, j), bufs=3),     # bf16 W column-tile stream
            bs((B, tn), lambda j: (0, j)),             # f32 x tile for epilogue
            bs((1, D), lambda j: (0, 0)),              # gamma: resident
            bs((1, D), lambda j: (0, 0)),              # beta: resident
        ]
        return pl.pallas_call(
            gating_context_kernel,
            out_shape=jax.ShapeDtypeStruct((B, D), x.dtype),
            grid=(n_tiles,),
            in_specs=in_specs,
            out_specs=pl.BlockSpec((B, tn), lambda j: (0, j)),
            compiler_params=pltpu.CompilerParams(
                dimension_semantics=("parallel",),     # shard feature tiles across TCs
                vmem_limit_bytes=vmem_limit),
            cost_estimate=cost,
        )

    args = (x_bf16, w_bf16, x, gamma2, beta2)

    if n_tiles > 1:
        # Pipeline-depth hints are perf-only; fall back to default double
        # buffering if this build rejects pipeline_mode on the top-level grid.
        try:
            return jax.block_until_ready(build(True)(*args))
        except Exception:
            pass
    return build(False)(*args)


def gating_context_ref(x, w, gamma, beta, *, bf16_matmul=True):
    """Pure-JAX reference (PyTorch training-mode BatchNorm1d semantics)."""
    if bf16_matmul:
        gates = jnp.dot(x.astype(jnp.bfloat16), w.astype(jnp.bfloat16),
                        preferred_element_type=jnp.float32)
    else:
        gates = x @ w
    mean = jnp.mean(gates, axis=0, keepdims=True)
    var = jnp.mean((gates - mean) ** 2, axis=0, keepdims=True)
    g = (gates - mean) / jnp.sqrt(var + BN_EPS) * gamma[None, :] + beta[None, :]
    return x * jax.nn.sigmoid(g)


if __name__ == "__main__":
    key = jax.random.PRNGKey(0)
    k_x, k_w, k_x2, k_w2, k_g2, k_b2 = jax.random.split(key, 6)

    # --- Small shape matching the module (dim=256): single grid step path. ---
    B, dim = 8, 256
    x = jax.random.normal(k_x, (B, dim), dtype=jnp.float32)
    gating_weights = jax.random.normal(k_w, (dim, dim), dtype=jnp.float32) / math.sqrt(dim)
    w_bf16 = prepare_gating_weights(gating_weights)   # one-time prep, outside the call path
    gamma = jnp.ones((dim,), dtype=jnp.float32)       # BatchNorm1d defaults
    beta = jnp.zeros((dim,), dtype=jnp.float32)

    out = jax.block_until_ready(gating_context(x, w_bf16, gamma, beta))
    assert out.shape == (B, dim)

    ref_matched = gating_context_ref(x, gating_weights, gamma, beta, bf16_matmul=True)
    err_matched = float(jnp.max(jnp.abs(out - ref_matched)))
    assert err_matched < 1e-3, f"matched-reference max abs err {err_matched}"

    ref_f32 = gating_context_ref(x, gating_weights, gamma, beta, bf16_matmul=False)
    err_f32 = float(jnp.max(jnp.abs(out - ref_f32)))
    assert err_f32 < 5e-2, f"f32-reference max abs err {err_f32}"

    # --- Larger shape: exercises the multi-tile, pipelined feature-axis path. ---
    B2, dim2 = 16, 1024
    x2 = jax.random.normal(k_x2, (B2, dim2), dtype=jnp.float32)
    w2 = jax.random.normal(k_w2, (dim2, dim2), dtype=jnp.float32) / math.sqrt(dim2)
    w2_bf16 = prepare_gating_weights(w2)
    gamma2 = 1.0 + 0.1 * jax.random.normal(k_g2, (dim2,), dtype=jnp.float32)
    beta2 = 0.1 * jax.random.normal(k_b2, (dim2,), dtype=jnp.float32)

    out2 = jax.block_until_ready(gating_context(x2, w2_bf16, gamma2, beta2))
    assert out2.shape == (B2, dim2)
    ref2 = gating_context_ref(x2, w2, gamma2, beta2, bf16_matmul=True)
    err2 = float(jnp.max(jnp.abs(out2 - ref2)))
    assert err2 < 1e-3, f"large-shape matched-reference max abs err {err2}"

    print("KERNEL_OK")
</pallas_src>

<mosaic_0001>
module attributes {stable_mosaic.version = 11 : i64} {
  func.func @gating_context_kernel(%arg0: i32, %arg1: memref<8x256xbf16, #tpu.memory_space<vmem>>, %arg2: memref<256x256xbf16, #tpu.memory_space<vmem>>, %arg3: memref<8x256xf32, #tpu.memory_space<vmem>>, %arg4: memref<1x256xf32, #tpu.memory_space<vmem>>, %arg5: memref<1x256xf32, #tpu.memory_space<vmem>>, %arg6: memref<8x256xf32, #tpu.memory_space<vmem>>) attributes {dimension_semantics = [#tpu.dimension_semantics<parallel>], iteration_bounds = array<i64: 1>, scalar_prefetch = 0 : i64, scratch_operands = 0 : i64, tpu.core_type = #tpu.core_type<tc>, window_params = [{pipeline_mode = #tpu.pipeline_mode<synchronous>, transform_indices = @transform_0, window_bounds = array<i64: 8, 256>}, {transform_indices = @transform_1, window_bounds = array<i64: 256, 256>}, {transform_indices = @transform_2, window_bounds = array<i64: 8, 256>}, {pipeline_mode = #tpu.pipeline_mode<synchronous>, transform_indices = @transform_3, window_bounds = array<i64: 1, 256>}, {pipeline_mode = #tpu.pipeline_mode<synchronous>, transform_indices = @transform_4, window_bounds = array<i64: 1, 256>}, {transform_indices = @transform_5, window_bounds = array<i64: 8, 256>}]} {
    %c0 = arith.constant 0 : index
    %c0_0 = arith.constant 0 : index
    %0 = vector.load %arg1[%c0, %c0_0] : memref<8x256xbf16, #tpu.memory_space<vmem>>, vector<8x256xbf16>
    %c0_1 = arith.constant 0 : index
    %c0_2 = arith.constant 0 : index
    %1 = vector.load %arg2[%c0_1, %c0_2] : memref<256x256xbf16, #tpu.memory_space<vmem>>, vector<256x256xbf16>
    %cst = arith.constant dense<0.000000e+00> : vector<8x256xf32>
    %2 = tpu.matmul %0, %1, %cst {dimension_numbers = #tpu.dot_dimension_numbers<[1], [0], [0], [1], [0, 0, 1, 1], [], []>} : vector<8x256xbf16>, vector<256x256xbf16>, vector<8x256xf32> -> vector<8x256xf32>
    %cst_3 = arith.constant dense<0.000000e+00> : vector<256xf32>
    %3 = vector.multi_reduction <add>, %2, %cst_3 [0] : vector<8x256xf32> to vector<256xf32>
    %4 = vector.shape_cast %3 : vector<256xf32> to vector<1x256xf32>
    %cst_4 = arith.constant 1.250000e-01 : f32
    %5 = vector.broadcast %cst_4 : f32 to vector<1x256xf32>
    %6 = arith.mulf %4, %5 : vector<1x256xf32>
    %7 = vector.broadcast %6 : vector<1x256xf32> to vector<8x256xf32>
    %8 = arith.subf %2, %7 : vector<8x256xf32>
    %9 = arith.mulf %8, %8 : vector<8x256xf32>
    %cst_5 = arith.constant dense<0.000000e+00> : vector<256xf32>
    %10 = vector.multi_reduction <add>, %9, %cst_5 [0] : vector<8x256xf32> to vector<256xf32>
    %11 = vector.shape_cast %10 : vector<256xf32> to vector<1x256xf32>
    %cst_6 = arith.constant 1.250000e-01 : f32
    %12 = vector.broadcast %cst_6 : f32 to vector<1x256xf32>
    %13 = arith.mulf %11, %12 : vector<1x256xf32>
    %cst_7 = arith.constant 9.99999974E-6 : f32
    %14 = vector.broadcast %cst_7 : f32 to vector<1x256xf32>
    %15 = arith.addf %13, %14 : vector<1x256xf32>
    %16 = math.rsqrt %15 : vector<1x256xf32>
    %c256_i32 = arith.constant 256 : i32
    %17 = arith.muli %arg0, %c256_i32 : i32
    %18 = tpu.assume_multiple %17, 256 : i32
    %c0_8 = arith.constant 0 : index
    %19 = arith.index_cast %18 : i32 to index
    %20 = vector.load %arg4[%c0_8, %19] : memref<1x256xf32, #tpu.memory_space<vmem>>, vector<1x256xf32>
    %21 = arith.mulf %20, %16 : vector<1x256xf32>
    %c0_9 = arith.constant 0 : index
    %22 = arith.index_cast %18 : i32 to index
    %23 = vector.load %arg5[%c0_9, %22] : memref<1x256xf32, #tpu.memory_space<vmem>>, vector<1x256xf32>
    %24 = vector.broadcast %21 : vector<1x256xf32> to vector<8x256xf32>
    %25 = arith.mulf %8, %24 : vector<8x256xf32>
    %26 = vector.broadcast %23 : vector<1x256xf32> to vector<8x256xf32>
    %27 = arith.addf %25, %26 : vector<8x256xf32>
    %28 = arith.negf %27 : vector<8x256xf32>
    %29 = math.exp %28 : vector<8x256xf32>
    %cst_10 = arith.constant 1.000000e+00 : f32
    %30 = vector.broadcast %cst_10 : f32 to vector<8x256xf32>
    %31 = arith.addf %30, %29 : vector<8x256xf32>
    %32 = arith.divf %30, %31 : vector<8x256xf32>
    %c0_11 = arith.constant 0 : index
    %c0_12 = arith.constant 0 : index
    %33 = vector.load %arg3[%c0_11, %c0_12] : memref<8x256xf32, #tpu.memory_space<vmem>>, vector<8x256xf32>
    %34 = arith.mulf %33, %32 : vector<8x256xf32>
    %c0_13 = arith.constant 0 : index
    %c0_14 = arith.constant 0 : index
    %35 = vector.load %arg6[%c0_13, %c0_14] : memref<8x256xf32, #tpu.memory_space<vmem>>, vector<8x256xf32>
    tpu.vector_store %arg6[%c0_13, %c0_14], %34 {strides = array<i32>} : memref<8x256xf32, #tpu.memory_space<vmem>>, vector<8x256xf32>,
    return
  }
  func.func @transform_0(%arg0: i32) -> (i32, i32) {
    %c0_i32 = arith.constant 0 : i32
    %c0_i32_0 = arith.constant 0 : i32
    %c0_i32_1 = arith.constant 0 : i32
    return %c0_i32, %c0_i32_0 : i32, i32
  }
  func.func @transform_1(%arg0: i32) -> (i32, i32) {
    %c0_i32 = arith.constant 0 : i32
    %c0_i32_0 = arith.constant 0 : i32
    return %c0_i32, %arg0 : i32, i32
  }
  func.func @transform_2(%arg0: i32) -> (i32, i32) {
    %c0_i32 = arith.constant 0 : i32
    %c0_i32_0 = arith.constant 0 : i32
    return %c0_i32, %arg0 : i32, i32
  }
  func.func @transform_3(%arg0: i32) -> (i32, i32) {
    %c0_i32 = arith.constant 0 : i32
    %c0_i32_0 = arith.constant 0 : i32
    %c0_i32_1 = arith.constant 0 : i32
    return %c0_i32, %c0_i32_0 : i32, i32
  }
  func.func @transform_4(%arg0: i32) -> (i32, i32) {
    %c0_i32 = arith.constant 0 : i32
    %c0_i32_0 = arith.constant 0 : i32
    %c0_i32_1 = arith.constant 0 : i32
    return %c0_i32, %c0_i32_0 : i32, i32
  }
  func.func @transform_5(%arg0: i32) -> (i32, i32) {
    %c0_i32 = arith.constant 0 : i32
    %c0_i32_0 = arith.constant 0 : i32
    return %c0_i32, %arg0 : i32, i32
  }
}

</mosaic_0001>

<bundles_post_ra>
// kernel: tpu_custom_call.1
= control target key start
LH: loop header
LB: loop body
LE: loop exit
PB: predicated region body
PF: predicated region fallthrough
CT: control target
= control target key end

     0   :  { %10 = vsyncpa [#allocation3], 0  ;;  %s713_s0 = inlined_call_operand.hbm [shape: bf16[8,256], index: 0, kind: input, shape index: {}]   ;;  %s714_s1 = inlined_call_operand.hbm [shape: bf16[256,256], index: 1, kind: input, shape index: {}]   ;;  %s715_s2 = inlined_call_operand.hbm [shape: f32[8,256], index: 2, kind: input, shape index: {}]   ;;  %s716_s3 = inlined_call_operand.vmem [shape: f32[1,256], index: 3, kind: input, shape index: {}]   ;;  %s717_s4 = inlined_call_operand.vmem [shape: f32[1,256], index: 4, kind: input, shape index: {}]   ;;  %s718_s5 = inlined_call_operand.hbm [shape: f32[8,256], index: 5, kind: output, shape index: {}]  }
   0x1   :  { %11 = vsyncpa [#allocation6], 0 }
   0x2   :  { %12 = vsyncpa [#allocation4], 0  ;;  %s622_s18 = smov [#allocation5]   ;;  %s528_s22 = scalar_lea.hbm %s714_s1, 4096 }
   0x3   :  { %s28_s19 = sshll.u32 %s622_s18, 4  ;;  %p529_p0 = scmp.ne.s32.totalorder %s714_s1, %s528_s22  ;;  %s29_s19 = int_to_ptr.vmem [resolvable:$true] %s28_s19 }
   0x4   :  { %p532_p1 = scmp.lt.u32.totalorder %s528_s22, %s714_s1 }
   0x6   :  { %p534_p2 = pnand %p532_p1, %p529_p0 }
   0x8   :  { %537 = shalt.err (!%p534_p2)
}
   0x9   :  { %s538_s27 = scalar_lea.vmem %s29_s19, 4096  ;;  %p543_p4 = scmp.lt.s32.totalorder %s29_s19, %s29_s19 }
   0xa   :  { %p539_p3 = scmp.ne.s32.totalorder %s29_s19, %s538_s27  ;;  %p544_p5 = scmp.lt.s32.totalorder %s538_s27, %s538_s27 }
   0xc   :  { %p545_p6 = por %p544_p5, %p543_p4 }
   0xe   :  { %p546_p7 = pnand %p545_p6, %p539_p3 }
  0x10   :  { %549 = shalt.err (!%p546_p7)
}
  0x11   :  { %s623_s28 = smov 128   ;;  %s624_s29 = smov 8  }
  0x12   :  { %34 = dma.hbm_to_vmem [thread:$0]  %s714_s1, 4096, %s29_s19, [#allocation6], %s623_s28, %s623_s28, %s624_s29  }
  0x13   :  { %s625_s7 = smov [#allocation2]   ;;  %s626_s9 = smov [#allocation7]  }
  0x14   :  { %s19_s8 = sshll.u32 %s625_s7, 4  ;;  %s41_s10 = sshll.u32 %s626_s9, 4  ;;  %s20_s8 = int_to_ptr.vmem [resolvable:$true] %s19_s8  ;;  %s42_s10 = int_to_ptr.vmem [resolvable:$true] %s41_s10 }
  0x15   :  { %s550_s13 = scalar_lea.hbm %s713_s0, 128 }
  0x16   :  { %p551_p8 = scmp.ne.s32.totalorder %s713_s0, %s550_s13  ;;  %p554_p9 = scmp.lt.u32.totalorder %s550_s13, %s713_s0 }
  0x18   :  { %p556_p10 = pnand %p554_p9, %p551_p8 }
  0x1a   :  { %559 = shalt.err (!%p556_p10)
}
  0x1b   :  { %s560_s1 = scalar_lea.vmem %s20_s8, 128  ;;  %p565_p12 = scmp.lt.s32.totalorder %s20_s8, %s20_s8 }
  0x1c   :  { %p561_p11 = scmp.ne.s32.totalorder %s20_s8, %s560_s1  ;;  %p566_p13 = scmp.lt.s32.totalorder %s560_s1, %s560_s1 }
  0x1e   :  { %p567_p0 = por %p566_p13, %p565_p12 }
  0x20   :  { %p568_p1 = pnand %p567_p0, %p561_p11 }
  0x22   :  { %571 = shalt.err (!%p568_p1)
}
  0x23   :  { %22 = dma.hbm_to_vmem [thread:$0]  %s713_s0, 128, %s20_s8, [#allocation3]  }
  0x24   :  { %s572_s22 = scalar_lea.hbm %s715_s2, 256 }
  0x25   :  { %p573_p2 = scmp.ne.s32.totalorder %s715_s2, %s572_s22  ;;  %p576_p3 = scmp.lt.u32.totalorder %s572_s22, %s715_s2 }
  0x27   :  { %p578_p4 = pnand %p576_p3, %p573_p2 }
  0x29   :  { %581 = shalt.err (!%p578_p4)
}
  0x2a   :  { %s582_s27 = scalar_lea.vmem %s42_s10, 256  ;;  %p587_p6 = scmp.lt.s32.totalorder %s42_s10, %s42_s10 }
  0x2b   :  { %p583_p5 = scmp.ne.s32.totalorder %s42_s10, %s582_s27  ;;  %p588_p7 = scmp.lt.s32.totalorder %s582_s27, %s582_s27 }
  0x2d   :  { %p589_p8 = por %p588_p7, %p587_p6 }
  0x2f   :  { %p590_p9 = pnand %p589_p8, %p583_p5 }
  0x31   :  { %593 = shalt.err (!%p590_p9)
}
  0x32   :  { %44 = dma.hbm_to_vmem [thread:$0]  %s715_s2, 256, %s42_s10, [#allocation6]  }
  0x33   :  { %616 = dma.done.wait [#allocation3], 128  }
  0x34   :  { %617 = vsyncadd [#allocation3], 4294967168 }
  0x35   :  { %618 = dma.done.wait [#allocation6], 4352  }
  0x36   :  { %619 = vsyncadd [#allocation6], 4294962944  ;;  %v466_v0 = vld [vmem:[#allocation5 + $0x4] ss:$8 sps:$4 sm:$0xff]   ;;  %v468_v1 = vld [vmem:[#allocation5] ss:$8 sps:$4 sm:$0xff]  }
  0x37   :  { %258 = vmatprep.subr.bf16.mxu0 %v466_v0  ;;  %v469_v2 = vld [vmem:[#allocation5 + $0x14] ss:$8 sps:$4 sm:$0xff]   ;;  %v471_v3 = vld [vmem:[#allocation5 + $0x10] ss:$8 sps:$4 sm:$0xff]   ;;  %v472_v4 = vld [vmem:[#allocation5 + $0x24] ss:$8 sps:$4 sm:$0xff]  }
  0x38   :  { %259 = vmatpush1.bf16.msra.mxu0 %v468_v1  ;;  %v474_v5 = vld [vmem:[#allocation5 + $0x20] ss:$8 sps:$4 sm:$0xff]   ;;  %v475_v6 = vld [vmem:[#allocation5 + $0x34] ss:$8 sps:$4 sm:$0xff]   ;;  %v477_v7 = vld [vmem:[#allocation5 + $0x30] ss:$8 sps:$4 sm:$0xff]  }
  0x39   :  { %260 = vmatprep.subr.bf16.mxu0 %v469_v2  ;;  %v478_v8 = vld [vmem:[#allocation5 + $0x44] ss:$8 sps:$4 sm:$0xff]   ;;  %v480_v9 = vld [vmem:[#allocation5 + $0x40] ss:$8 sps:$4 sm:$0xff]   ;;  %v481_v10 = vld [vmem:[#allocation5 + $0x54] ss:$8 sps:$4 sm:$0xff]  }
  0x3a   :  { %v483_v11 = vld [vmem:[#allocation5 + $0x50] ss:$8 sps:$4 sm:$0xff]   ;;  %v484_v12 = vld [vmem:[#allocation5 + $0x64] ss:$8 sps:$4 sm:$0xff]   ;;  %v486_v15 = vld [vmem:[#allocation5 + $0x60] ss:$8 sps:$4 sm:$0xff]  }
  0x3b   :  { %v58_v13 = vld [vmem:[#allocation2] sm:$0xff]  ;;  %v490_v18 = vld [vmem:[#allocation5 + $0x84] ss:$8 sps:$4 sm:$0xff]   ;;  %v492_v19 = vld [vmem:[#allocation5 + $0x80] ss:$8 sps:$4 sm:$0xff]  }
  0x3c   :  { %261 = vmatpush1.bf16.msra.mxu0 %v471_v3  ;;  %v424_v14 = vcombine.high %v58_v13, %v58_v13  ;;  %v487_v16 = vld [vmem:[#allocation5 + $0x74] ss:$8 sps:$4 sm:$0xff]   ;;  %v489_v17 = vld [vmem:[#allocation5 + $0x70] ss:$8 sps:$4 sm:$0xff]   ;;  %v496_v22 = vld [vmem:[#allocation5 + $0xa4] ss:$8 sps:$4 sm:$0xff]   ;;  %v423_v34 = vcombine.low %v58_v13, %v58_v13 }
  0x3d   :  { %262 = vmatprep.subr.bf16.mxu0 %v472_v4  ;;  %v493_v20 = vld [vmem:[#allocation5 + $0x94] ss:$8 sps:$4 sm:$0xff]   ;;  %v495_v21 = vld [vmem:[#allocation5 + $0x90] ss:$8 sps:$4 sm:$0xff]   ;;  %v498_v23 = vld [vmem:[#allocation5 + $0xa0] ss:$8 sps:$4 sm:$0xff]  }
  0x3e   :  { %290 = vmatprep.mubr.bf16.mxu0 %v424_v14  ;;  %v499_v24 = vld [vmem:[#allocation5 + $0xb4] ss:$8 sps:$4 sm:$0xff]   ;;  %v501_v25 = vld [vmem:[#allocation5 + $0xb0] ss:$8 sps:$4 sm:$0xff]   ;;  %v502_v26 = vld [vmem:[#allocation5 + $0xc4] ss:$8 sps:$4 sm:$0xff]  }
  0x3f   :  { %v504_v27 = vld [vmem:[#allocation5 + $0xc0] ss:$8 sps:$4 sm:$0xff]   ;;  %v505_v28 = vld [vmem:[#allocation5 + $0xd4] ss:$8 sps:$4 sm:$0xff]   ;;  %v507_v29 = vld [vmem:[#allocation5 + $0xd0] ss:$8 sps:$4 sm:$0xff]  }
  0x40   :  { %263 = vmatpush1.bf16.msra.mxu0 %v474_v5  ;;  %v508_v30 = vld [vmem:[#allocation5 + $0xe4] ss:$8 sps:$4 sm:$0xff]   ;;  %v510_v31 = vld [vmem:[#allocation5 + $0xe0] ss:$8 sps:$4 sm:$0xff]   ;;  %v511_v32 = vld [vmem:[#allocation5 + $0xf4] ss:$8 sps:$4 sm:$0xff]  }
  0x41   :  { %264 = vmatprep.subr.bf16.mxu0 %v475_v6  ;;  %v513_v33 = vld [vmem:[#allocation5 + $0xf0] ss:$8 sps:$4 sm:$0xff]  }
  0x44   :  { %265 = vmatpush1.bf16.msra.mxu0 %v477_v7 }
  0x45   :  { %266 = vmatprep.subr.bf16.mxu0 %v478_v8 }
  0x48   :  { %267 = vmatpush1.bf16.msra.mxu0 %v480_v9  ;;  %v627_v9 = vmov 1966171168  }
  0x49   :  { %268 = vmatprep.subr.bf16.mxu0 %v481_v10  ;;  %v344_v10 = vunpack.c.l.s4 %v627_v9 }
  0x4c   :  { %269 = vmatpush1.bf16.msra.mxu0 %v483_v11  ;;  %v346_v11 = vlaneseq }
  0x4d   :  { %270 = vmatprep.subr.bf16.mxu0 %v484_v12  ;;  %v345_v12 = vunpack.c.0.s8 %v344_v10 }
  0x4e   :  { %v347_v13 = vshrl.u32 %v346_v11, 7 }
  0x50   :  { %271 = vmatpush1.bf16.msra.mxu0 %v486_v15  ;;  %v348_v15 = vsub.s32 %v345_v12, %v347_v13 }
  0x51   :  { %272 = vmatprep.subr.bf16.mxu0 %v487_v16 }
  0x54   :  { %273 = vmatpush1.bf16.msra.mxu0 %v489_v17 }
  0x55   :  { %274 = vmatprep.subr.bf16.mxu0 %v490_v18 }
  0x58   :  { %275 = vmatpush1.bf16.msra.mxu0 %v492_v19  ;;  %v339_v19 = vld [vmem:[%s716_s3] sm:$0x3]  ;;  %s628_s3 = smov [#allocation8]  }
  0x59   :  { %276 = vmatprep.subr.bf16.mxu0 %v493_v20 }
  0x5c   :  { %277 = vmatpush1.bf16.msra.mxu0 %v495_v21  ;;  %v364_v21 = vsub.s32 0, %v347_v13 }
  0x5d   :  { %278 = vmatprep.subr.bf16.mxu0 %v496_v22  ;;  %v368_v22 = vsub.s32 1, %v347_v13 }
  0x60   :  { %279 = vmatpush1.bf16.msra.mxu0 %v498_v23  ;;  %v360_v23 = vld [vmem:[%s717_s4] sm:$0x3]  ;;  %s411_s4 = sshll.u32 %s628_s3, 4  ;;  %s412_s4 = int_to_ptr.vmem [resolvable:$true] %s411_s4 }
  0x61   :  { %280 = vmatprep.subr.bf16.mxu0 %v499_v24  ;;  %s594_s7 = scalar_lea.vmem %s412_s4, 256  ;;  %p599_p11 = scmp.lt.s32.totalorder %s412_s4, %s412_s4 }
  0x62   :  { %p595_p10 = scmp.ne.s32.totalorder %s412_s4, %s594_s7  ;;  %p600_p12 = scmp.lt.s32.totalorder %s594_s7, %s594_s7 }
  0x64   :  { %281 = vmatpush1.bf16.msra.mxu0 %v501_v25  ;;  %p601_p13 = por %p600_p12, %p599_p11 }
  0x65   :  { %282 = vmatprep.subr.bf16.mxu0 %v502_v26 }
  0x66   :  { %p602_p0 = pnand %p601_p13, %p595_p10 }
  0x68   :  { %283 = vmatpush1.bf16.msra.mxu0 %v504_v27  ;;  %v378_v27 = vrot.slane %v360_v23, %v364_v21 }
  0x69   :  { %284 = vmatprep.subr.bf16.mxu0 %v505_v28  ;;  %v382_v28 = vrot.slane %v360_v23, %v368_v22 }
  0x6c   :  { %285 = vmatpush1.bf16.msra.mxu0 %v507_v29 }
  0x6d   :  { %286 = vmatprep.subr.bf16.mxu0 %v508_v30 }
  0x70   :  { %287 = vmatpush1.bf16.msra.mxu0 %v510_v31 }
  0x71   :  { %288 = vmatprep.subr.bf16.mxu0 %v511_v32 }
  0x74   :  { %289 = vmatpush1.bf16.msra.mxu0 %v513_v33 }
  0x77   :  { %291 = vmatmul.mubr.bf16.vlgmr.msra.gmra.mrb[0].mxu0 %v423_v34 }
 0x14a   :  { %v292_v35 = vpop.f32.mrb[0].mxu0 }
 0x14b   :  { %v299_v36 = vrot.slane %v292_v35, 4  ;;  %v294_v37 = vpop.f32.mrb[1].mxu0 }
 0x14c   :  { %v305_v38 = vrot.slane %v294_v37, 4  ;;  %v296_v39 = vpop.f32.mrb[2].mxu0 }
 0x14d   :  { %v300_v40 = vadd.f32 %v299_v36, %v292_v35  ;;  %v297_v41 = vpop.f32.mrb[3].mxu0  ;;  %v399_v39 = vld [vmem:[#allocation7] sm:$0xff] }
 0x14e   :  { %v306_v42 = vadd.f32 %v305_v38, %v294_v37 }
 0x14f   :  { %v301_v43 = vrot.slane %v300_v40, 2 }
 0x150   :  { %v307_v44 = vrot.slane %v306_v42, 2 }
 0x151   :  { %v302_v45 = vadd.f32 %v301_v43, %v300_v40  ;;  %v400_v40 = vld [vmem:[#allocation7 + $0x8] sm:$0xff] }
 0x152   :  { %v308_v46 = vadd.f32 %v307_v44, %v306_v42 }
 0x153   :  { %v303_v47 = vrot.slane %v302_v45, 1 }
 0x154   :  { %v309_v48 = vrot.slane %v308_v46, 1 }
 0x155   :  { %v304_v49 = vadd.f32 %v303_v47, %v302_v45 }
 0x156   :  { %v310_v50 = vadd.f32 %v309_v48, %v308_v46 }
 0x157   :  { %v311_v51 = vmul.f32 0.125, %v304_v49 }
 0x158   :  { %v312_v52 = vmul.f32 0.125, %v310_v50 }
 0x159   :  { %v313_v53 = vsub.f32 %v292_v35, %v311_v51 }
 0x15a   :  { %v314_v54 = vsub.f32 %v294_v37, %v312_v52 }
 0x15b   :  { %v315_v55 = vmul.f32 %v313_v53, %v313_v53 }
 0x15c   :  { %v316_v56 = vmul.f32 %v314_v54, %v314_v54 }
 0x15d   :  { %v317_v57 = vrot.slane %v315_v55, 4 }
 0x15e   :  { %v323_v58 = vrot.slane %v316_v56, 4 }
 0x15f   :  { %v318_v59 = vadd.f32 %v317_v57, %v315_v55 }
 0x160   :  { %v324_v60 = vadd.f32 %v323_v58, %v316_v56 }
 0x161   :  { %v319_v61 = vrot.slane %v318_v59, 2 }
 0x162   :  { %v325_v62 = vrot.slane %v324_v60, 2 }
 0x163   :  { %v320_v63 = vadd.f32 %v319_v61, %v318_v59 }
 0x164   :  { %v326_v0 = vadd.f32 %v325_v62, %v324_v60 }
 0x165   :  { %v321_v1 = vrot.slane %v320_v63, 1 }
 0x166   :  { %v327_v2 = vrot.slane %v326_v0, 1 }
 0x167   :  { %v322_v3 = vadd.f32 %v321_v1, %v320_v63 }
 0x168   :  { %v328_v4 = vadd.f32 %v327_v2, %v326_v0 }
 0x169   :  { %v329_v5 = vmul.f32 0.125, %v322_v3 }
 0x16a   :  { %v330_v6 = vmul.f32 0.125, %v328_v4 }
 0x16b   :  { %v331_v7 = vadd.f32 1e-05, %v329_v5 }
 0x16c   :  { %v332_v8 = vadd.f32 1e-05, %v330_v6 }
 0x16d   :  { %516 = vrsqrt.f32 %v331_v7 }
 0x16e   :  { %518 = vrsqrt.f32 %v332_v8 }
 0x177   :  { %v517_v14 = vpop.eup %516 }
 0x178   :  { %v519_v16 = vpop.eup %518 }
 0x179   :  { %v342_v17 = vcombine.low %v517_v14, %v519_v16 }
 0x17b   :  { %v349_v18 = vrot.slane %v342_v17, %v348_v15 }
 0x17d   :  { %v356_v20 = vrot.slane %v349_v18, %v348_v15 }
 0x17f   :  { %v358_v24 = vmul.f32 %v356_v20, %v339_v19 }
 0x181   :  { %v365_v25 = vrot.slane %v358_v24, %v364_v21  ;;  %v369_v26 = vrot.slane %v358_v24, %v368_v22 }
 0x183   :  { %v372_v29 = vmul.f32 %v365_v25, %v313_v53  ;;  %v373_v30 = vmul.f32 %v369_v26, %v314_v54 }
 0x185   :  { %v385_v31 = vadd.f32 %v378_v27, %v372_v29  ;;  %v386_v32 = vadd.f32 %v382_v28, %v373_v30 }
 0x187   :  { %v457_v33 = vmul.f32 -1.442695, %v385_v31  ;;  %v458_v34 = vmul.f32 -1.442695, %v386_v32 }
 0x189   :  { %520 = vpow2.f32 %v457_v33 }
 0x18a   :  { %522 = vpow2.f32 %v458_v34 }
 0x193   :  { %v521_v35 = vpop.eup %520 }
 0x194   :  { %v523_v36 = vpop.eup %522  ;;  %v393_v37 = vadd.f32 1.0, %v521_v35 }
 0x195   :  { %v394_v38 = vadd.f32 1.0, %v523_v36 }
 0x196   :  { %524 = vrcp.f32 %v393_v37 }
 0x197   :  { %526 = vrcp.f32 %v394_v38 }
 0x1a0   :  { %v525_v41 = vpop.eup %524 }
 0x1a1   :  { %v527_v42 = vpop.eup %526  ;;  %v401_v43 = vmul.f32 %v525_v41, %v399_v39 }
 0x1a2   :  { %v402_v44 = vmul.f32 %v527_v42, %v400_v40 }
 0x1a3   :  { %403 = vst [vmem:[#allocation8] sm:$0xff] %v401_v43 }
 0x1a4   :  { %404 = vst [vmem:[#allocation8 + $0x8] sm:$0xff] %v402_v44 }
 0x1a5   :  { %605 = shalt.err (!%p602_p0)
}
 0x1a6   :  { %s606_s10 = scalar_lea.hbm %s718_s5, 256 }
 0x1a7   :  { %p607_p1 = scmp.ne.s32.totalorder %s718_s5, %s606_s10  ;;  %p610_p2 = scmp.lt.u32.totalorder %s606_s10, %s718_s5 }
 0x1a9   :  { %p612_p3 = pnand %p610_p2, %p607_p1 }
 0x1ab   :  { %615 = shalt.err (!%p612_p3)
}
 0x1ac   :  { %414 = dma.vmem_to_hbm [thread:$0]  %s412_s4, 256, %s718_s5, [#allocation4]  }
 0x1ad   :  { %620 = dma.done.wait [#allocation4], 256  }
 0x1ae   :  { %621 = vsyncadd [#allocation4], 4294967040 }
 0x1af   :  { %418 = vsyncpa [#allocation3], 1 }
 0x1b0   :  { %419 = vsyncpa [#allocation6], 1 }
 0x1b1   :  { %420 = vsyncpa [#allocation4], 1 }

</bundles_post_ra>
